<compile_context>
chip_gen: v7x
topology: tpu7x:2x2x1
jax: 0.10.0
libtpu: 0.0.40
codegen_flags: <defaults>
</compile_context>

<pallas_src>
import functools
import math

import jax
import jax.numpy as jnp
import numpy as np
from jax.experimental import pallas as pl
from jax.experimental.pallas import tpu as pltpu

_NEG_BIG = -1e30          # instead of -inf: avoids inf-inf -> NaN on masked tiles
_LAMBERT_ITERS = 4        # Halley iterations in the XLA epilogue (cheap on a (B,) vector)


# ------------------------------ Pallas kernel -------------------------------

def _lse_sum_kernel(logits_ref, lse_ref, sum_ref, m_ref, l_ref, s_ref,
                    *, num_classes, block_c):
    """One (batch-tile, class-tile) grid step.

    Accumulates per row: running max m, running sum-exp l, running logit sum s.
    At the last class tile emits per-row logsumexp and per-row sum of logits.
    """
    c_idx = pl.program_id(1)
    nc = pl.num_programs(1)

    @pl.when(c_idx == 0)
    def _init():
        m_ref[...] = jnp.full(m_ref.shape, _NEG_BIG, jnp.float32)
        l_ref[...] = jnp.zeros(l_ref.shape, jnp.float32)
        s_ref[...] = jnp.zeros(s_ref.shape, jnp.float32)

    o = logits_ref[...].astype(jnp.float32)                       # (tb, tc)
    tb, tc = o.shape

    def _update(o_max_in, o_sum_in):
        m_prev = m_ref[...]                                       # (tb, 1)
        m_new = jnp.maximum(m_prev, jnp.max(o_max_in, axis=1, keepdims=True))
        alpha = jnp.exp(m_prev - m_new)
        l_ref[...] = alpha * l_ref[...] + jnp.sum(jnp.exp(o_max_in - m_new),
                                                  axis=1, keepdims=True)
        m_ref[...] = m_new
        s_ref[...] = s_ref[...] + jnp.sum(o_sum_in, axis=1, keepdims=True)

    ragged = (num_classes % block_c) != 0                         # static Python bool

    if ragged:
        last = nc - 1

        @pl.when(c_idx != last)
        def _fast():                                              # interior tiles: no masking
            _update(o, o)

        @pl.when(c_idx == last)
        def _edge():                                              # ragged last class tile
            col = jax.lax.broadcasted_iota(jnp.int32, (tb, tc), 1) + c_idx * block_c
            valid = col < num_classes
            _update(jnp.where(valid, o, _NEG_BIG), jnp.where(valid, o, 0.0))
    else:
        _update(o, o)

    @pl.when(c_idx == nc - 1)
    def _finalize():
        lse_ref[...] = (m_ref[...] + jnp.log(l_ref[...])).astype(lse_ref.dtype)
        sum_ref[...] = s_ref[...].astype(sum_ref.dtype)


# --------------------------- Lambert-W (XLA epilogue) ------------------------

def _lambertw_principal(y):
    """Lambert W_0(y) for y >= -1/e, elementwise.

    Branch-point series near y = -1/e, log1p elsewhere (log1p so the guess does not
    collapse to 0 for y in (-0.25, 0)), then a few Halley iterations.
    """
    e = math.e
    p = jnp.sqrt(jnp.maximum(2.0 * (e * y + 1.0), 0.0))
    w_branch = -1.0 + p - (p * p) / 3.0 + (11.0 / 72.0) * p * p * p
    w_log = jnp.log1p(jnp.maximum(y, -0.25))
    w = jnp.where(y < -0.25, w_branch, w_log)
    for _ in range(_LAMBERT_ITERS):
        ew = jnp.exp(w)
        f = w * ew - y
        wp1 = w + 1.0
        den = ew * wp1 * wp1 - 0.5 * f * (w + 2.0)
        den = jnp.where(jnp.abs(den) < 1e-30, 1e-30, den)
        w = w - f * wp1 / den
    return w


# --------------------------------- module -----------------------------------

class LabelSmoothingCrossEntropyWithSuperLoss:
    """JAX/Pallas port of the PyTorch module (forward only)."""

    def __init__(self, eps=0.1, reduction='mean', classes=330, lam=0.25):
        self.eps = eps
        self.reduction = reduction
        self.classes = classes
        self.lam = lam
        self.tau = math.log(float(classes))

    def forward(self, output, target, *, block_b=None, block_c=None):
        B, C = output.shape

        if block_c is None:
            # Full class dim when it fits comfortably (single class tile, no online
            # rescale); otherwise a big lane-aligned tile.
            block_c = C if C <= 2048 else 2048
        if block_b is None:
            if B <= 16:
                block_b = B
            else:
                # >= 2 batch blocks (v7x megacore), multiple of 8, capped at 256.
                block_b = min(256, max(8, (B // 2) // 8 * 8))

        grid = (pl.cdiv(B, block_b), pl.cdiv(C, block_c))
        kern = functools.partial(_lse_sum_kernel, num_classes=C, block_c=block_c)

        lse_row, sum_row = pl.pallas_call(
            kern,
            grid_spec=pltpu.PrefetchScalarGridSpec(
                num_scalar_prefetch=0,
                grid=grid,
                in_specs=[
                    pl.BlockSpec((block_b, block_c), lambda b, c: (b, c)),  # logits
                ],
                out_specs=[
                    pl.BlockSpec((block_b, 1), lambda b, c: (b, 0)),        # per-row lse
                    pl.BlockSpec((block_b, 1), lambda b, c: (b, 0)),        # per-row sum
                ],
                scratch_shapes=[
                    pltpu.VMEM((block_b, 1), jnp.float32),   # running max
                    pltpu.VMEM((block_b, 1), jnp.float32),   # running sum-exp
                    pltpu.VMEM((block_b, 1), jnp.float32),   # running logit sum
                ],
            ),
            out_shape=(
                jax.ShapeDtypeStruct((B, 1), jnp.float32),
                jax.ShapeDtypeStruct((B, 1), jnp.float32),
            ),
            compiler_params=pltpu.CompilerParams(
                dimension_semantics=("parallel", "arbitrary")),
        )(output)

        lse = lse_row[:, 0]
        s = sum_row[:, 0]

        # ---- lane-dense (B,) epilogue in XLA ------------------------------------
        # Label-smoothing term per row: -sum_c log_softmax = C*lse - sum_c o
        ls_row = C * lse - s
        if self.reduction == 'sum':
            loss = jnp.sum(ls_row)
        elif self.reduction == 'mean':
            loss = jnp.mean(ls_row)
        else:  # 'none'
            loss = ls_row

        # NLL per row via a tiny gather (B elements).
        tgt = target.astype(jnp.int32)
        tgt_logit = jnp.take_along_axis(output.astype(jnp.float32),
                                        tgt[:, None], axis=1)[:, 0]
        nll = lse - tgt_logit

        # SuperLoss: sigma = exp(-W(0.5*max(-2/e, (nll - tau)/lam)));
        # log(sigma) == -W exactly, so lam*log(sigma)^2 == lam*W^2.
        shifted = nll - self.tau
        y = 0.5 * jnp.maximum(-2.0 / math.e, shifted * (1.0 / self.lam))
        w = _lambertw_principal(y)
        sigma = jnp.exp(-w)
        super_loss = jnp.mean(shifted * sigma + self.lam * (w * w))

        return loss * self.eps / C + (1.0 - self.eps) * super_loss

    __call__ = forward


# ----------------------------- float64 reference -----------------------------

def _lambertw_np(y, iters=64):
    y = np.asarray(y, np.float64)
    p = np.sqrt(np.maximum(2.0 * (np.e * y + 1.0), 0.0))
    w = np.where(y < -0.25,
                 -1.0 + p - p * p / 3.0 + (11.0 / 72.0) * p ** 3,
                 np.log1p(np.maximum(y, -0.25)))
    for _ in range(iters):
        ew = np.exp(w)
        f = w * ew - y
        wp1 = w + 1.0
        den = ew * wp1 * wp1 - 0.5 * f * (w + 2.0)
        den = np.where(np.abs(den) < 1e-300, 1e-300, den)
        w = w - f * wp1 / den
    return w


def _reference_forward(output, target, *, eps, reduction, classes, lam):
    o = np.asarray(output, np.float64)
    t = np.asarray(target)
    B, C = o.shape
    m = o.max(axis=1, keepdims=True)
    lse = (m + np.log(np.exp(o - m).sum(axis=1, keepdims=True)))[:, 0]
    log_preds = o - lse[:, None]
    if reduction == 'sum':
        loss = -log_preds.sum()
    else:
        loss = -log_preds.sum(axis=1)
        if reduction == 'mean':
            loss = loss.mean()
    nll = -log_preds[np.arange(B), t]
    tau = math.log(float(classes))
    y = 0.5 * np.maximum(-2.0 / np.e, (nll - tau) / lam)
    w = _lambertw_np(y)
    sigma = np.exp(-w)
    super_loss = ((nll - tau) * sigma + lam * np.log(sigma) ** 2).mean()
    return loss * eps / C + (1 - eps) * super_loss


if __name__ == "__main__":
    B, C = 128, 330   # module default class count; 330 is deliberately not a multiple of 128
    key = jax.random.PRNGKey(0)
    k_o, k_t = jax.random.split(key)
    output = jax.random.normal(k_o, (B, C), dtype=jnp.float32) * 2.0
    target = jax.random.randint(k_t, (B,), 0, C, dtype=jnp.int32)

    criterion = LabelSmoothingCrossEntropyWithSuperLoss(eps=0.1, reduction='mean', classes=C)
    ref = _reference_forward(np.asarray(output), np.asarray(target),
                             eps=0.1, reduction='mean', classes=C, lam=0.25)

    # Default tiling: single class tile (block_c = C), two batch blocks.
    loss_default = jax.block_until_ready(criterion.forward(output, target))
    np.testing.assert_allclose(float(loss_default), float(ref), rtol=1e-3, atol=1e-3)

    # Forced multi-tile class axis: exercises the online-logsumexp path and the
    # ragged last tile (columns 256..329 valid out of 384).
    loss_tiled = jax.block_until_ready(
        criterion.forward(output, target, block_b=64, block_c=128))
    np.testing.assert_allclose(float(loss_tiled), float(ref), rtol=1e-3, atol=1e-3)

    print("KERNEL_OK")
</pallas_src>

<mosaic_0001>
module attributes {stable_mosaic.version = 11 : i64} {
  func.func @_lse_sum_kernel(%arg0: i32, %arg1: i32, %arg2: memref<64x330xf32, #tpu.memory_space<vmem>>, %arg3: memref<64x1xf32, #tpu.memory_space<vmem>>, %arg4: memref<64x1xf32, #tpu.memory_space<vmem>>, %arg5: memref<64x1xf32, #tpu.memory_space<vmem>>, %arg6: memref<64x1xf32, #tpu.memory_space<vmem>>, %arg7: memref<64x1xf32, #tpu.memory_space<vmem>>) attributes {dimension_semantics = [#tpu.dimension_semantics<parallel>, #tpu.dimension_semantics<arbitrary>], iteration_bounds = array<i64: 2, 1>, scalar_prefetch = 0 : i64, scratch_operands = 3 : i64, tpu.core_type = #tpu.core_type<tc>, window_params = [{transform_indices = @transform_0, window_bounds = array<i64: 64, 330>}, {transform_indices = @transform_1, window_bounds = array<i64: 64, 1>}, {transform_indices = @transform_2, window_bounds = array<i64: 64, 1>}]} {
    %c0_i32 = arith.constant 0 : i32
    %0 = arith.cmpi eq, %arg1, %c0_i32 : i32
    %1 = arith.extui %0 : i1 to i32
    %c0_i32_0 = arith.constant 0 : i32
    %2 = arith.cmpi ne, %1, %c0_i32_0 : i32
    scf.if %2 {
      %cst_18 = arith.constant -1.000000e+30 : f32
      %28 = vector.broadcast %cst_18 : f32 to vector<64x1xf32>
      %c0_19 = arith.constant 0 : index
      %c0_20 = arith.constant 0 : index
      %29 = vector.load %arg5[%c0_19, %c0_20] : memref<64x1xf32, #tpu.memory_space<vmem>>, vector<64x1xf32>
      tpu.vector_store %arg5[%c0_19, %c0_20], %28 {strides = array<i32>} : memref<64x1xf32, #tpu.memory_space<vmem>>, vector<64x1xf32>,
      %cst_21 = arith.constant 0.000000e+00 : f32
      %30 = vector.broadcast %cst_21 : f32 to vector<64x1xf32>
      %c0_22 = arith.constant 0 : index
      %c0_23 = arith.constant 0 : index
      %31 = vector.load %arg6[%c0_22, %c0_23] : memref<64x1xf32, #tpu.memory_space<vmem>>, vector<64x1xf32>
      tpu.vector_store %arg6[%c0_22, %c0_23], %30 {strides = array<i32>} : memref<64x1xf32, #tpu.memory_space<vmem>>, vector<64x1xf32>,
      %cst_24 = arith.constant 0.000000e+00 : f32
      %32 = vector.broadcast %cst_24 : f32 to vector<64x1xf32>
      %c0_25 = arith.constant 0 : index
      %c0_26 = arith.constant 0 : index
      %33 = vector.load %arg7[%c0_25, %c0_26] : memref<64x1xf32, #tpu.memory_space<vmem>>, vector<64x1xf32>
      tpu.vector_store %arg7[%c0_25, %c0_26], %32 {strides = array<i32>} : memref<64x1xf32, #tpu.memory_space<vmem>>, vector<64x1xf32>,
    } else {
    }
    %c0 = arith.constant 0 : index
    %c0_1 = arith.constant 0 : index
    %3 = vector.load %arg2[%c0, %c0_1] : memref<64x330xf32, #tpu.memory_space<vmem>>, vector<64x330xf32>
    %c0_2 = arith.constant 0 : index
    %c0_3 = arith.constant 0 : index
    %4 = vector.load %arg5[%c0_2, %c0_3] : memref<64x1xf32, #tpu.memory_space<vmem>>, vector<64x1xf32>
    %cst = arith.constant dense<0xFF800000> : vector<64xf32>
    %5 = vector.multi_reduction <maximumf>, %3, %cst [1] : vector<64x330xf32> to vector<64xf32>
    %6 = vector.shape_cast %5 : vector<64xf32> to vector<64x1xf32>
    %7 = arith.maximumf %4, %6 : vector<64x1xf32>
    %8 = arith.subf %4, %7 : vector<64x1xf32>
    %9 = math.exp %8 : vector<64x1xf32>
    %c0_4 = arith.constant 0 : index
    %c0_5 = arith.constant 0 : index
    %10 = vector.load %arg6[%c0_4, %c0_5] : memref<64x1xf32, #tpu.memory_space<vmem>>, vector<64x1xf32>
    %11 = arith.mulf %9, %10 : vector<64x1xf32>
    %12 = vector.broadcast %7 : vector<64x1xf32> to vector<64x330xf32>
    %13 = arith.subf %3, %12 : vector<64x330xf32>
    %14 = math.exp %13 : vector<64x330xf32>
    %cst_6 = arith.constant dense<0.000000e+00> : vector<64xf32>
    %15 = vector.multi_reduction <add>, %14, %cst_6 [1] : vector<64x330xf32> to vector<64xf32>
    %16 = vector.shape_cast %15 : vector<64xf32> to vector<64x1xf32>
    %17 = arith.addf %11, %16 : vector<64x1xf32>
    %c0_7 = arith.constant 0 : index
    %c0_8 = arith.constant 0 : index
    %18 = vector.load %arg6[%c0_7, %c0_8] : memref<64x1xf32, #tpu.memory_space<vmem>>, vector<64x1xf32>
    tpu.vector_store %arg6[%c0_7, %c0_8], %17 {strides = array<i32>} : memref<64x1xf32, #tpu.memory_space<vmem>>, vector<64x1xf32>,
    %c0_9 = arith.constant 0 : index
    %c0_10 = arith.constant 0 : index
    %19 = vector.load %arg5[%c0_9, %c0_10] : memref<64x1xf32, #tpu.memory_space<vmem>>, vector<64x1xf32>
    tpu.vector_store %arg5[%c0_9, %c0_10], %7 {strides = array<i32>} : memref<64x1xf32, #tpu.memory_space<vmem>>, vector<64x1xf32>,
    %c0_11 = arith.constant 0 : index
    %c0_12 = arith.constant 0 : index
    %20 = vector.load %arg7[%c0_11, %c0_12] : memref<64x1xf32, #tpu.memory_space<vmem>>, vector<64x1xf32>
    %cst_13 = arith.constant dense<0.000000e+00> : vector<64xf32>
    %21 = vector.multi_reduction <add>, %3, %cst_13 [1] : vector<64x330xf32> to vector<64xf32>
    %22 = vector.shape_cast %21 : vector<64xf32> to vector<64x1xf32>
    %23 = arith.addf %20, %22 : vector<64x1xf32>
    %c0_14 = arith.constant 0 : index
    %c0_15 = arith.constant 0 : index
    %24 = vector.load %arg7[%c0_14, %c0_15] : memref<64x1xf32, #tpu.memory_space<vmem>>, vector<64x1xf32>
    tpu.vector_store %arg7[%c0_14, %c0_15], %23 {strides = array<i32>} : memref<64x1xf32, #tpu.memory_space<vmem>>, vector<64x1xf32>,
    %c0_i32_16 = arith.constant 0 : i32
    %25 = arith.cmpi eq, %arg1, %c0_i32_16 : i32
    %26 = arith.extui %25 : i1 to i32
    %c0_i32_17 = arith.constant 0 : i32
    %27 = arith.cmpi ne, %26, %c0_i32_17 : i32
    scf.if %27 {
      %c0_18 = arith.constant 0 : index
      %c0_19 = arith.constant 0 : index
      %28 = vector.load %arg5[%c0_18, %c0_19] : memref<64x1xf32, #tpu.memory_space<vmem>>, vector<64x1xf32>
      %c0_20 = arith.constant 0 : index
      %c0_21 = arith.constant 0 : index
      %29 = vector.load %arg6[%c0_20, %c0_21] : memref<64x1xf32, #tpu.memory_space<vmem>>, vector<64x1xf32>
      %30 = math.log %29 : vector<64x1xf32>
      %31 = arith.addf %28, %30 : vector<64x1xf32>
      %c0_22 = arith.constant 0 : index
      %c0_23 = arith.constant 0 : index
      %32 = vector.load %arg3[%c0_22, %c0_23] : memref<64x1xf32, #tpu.memory_space<vmem>>, vector<64x1xf32>
      tpu.vector_store %arg3[%c0_22, %c0_23], %31 {strides = array<i32>} : memref<64x1xf32, #tpu.memory_space<vmem>>, vector<64x1xf32>,
      %c0_24 = arith.constant 0 : index
      %c0_25 = arith.constant 0 : index
      %33 = vector.load %arg7[%c0_24, %c0_25] : memref<64x1xf32, #tpu.memory_space<vmem>>, vector<64x1xf32>
      %c0_26 = arith.constant 0 : index
      %c0_27 = arith.constant 0 : index
      %34 = vector.load %arg4[%c0_26, %c0_27] : memref<64x1xf32, #tpu.memory_space<vmem>>, vector<64x1xf32>
      tpu.vector_store %arg4[%c0_26, %c0_27], %33 {strides = array<i32>} : memref<64x1xf32, #tpu.memory_space<vmem>>, vector<64x1xf32>,
    } else {
    }
    return
  }
  func.func @transform_0(%arg0: i32, %arg1: i32) -> (i32, i32) {
    %c0_i32 = arith.constant 0 : i32
    return %arg0, %arg1 : i32, i32
  }
  func.func @transform_1(%arg0: i32, %arg1: i32) -> (i32, i32) {
    %c0_i32 = arith.constant 0 : i32
    %c0_i32_0 = arith.constant 0 : i32
    return %arg0, %c0_i32 : i32, i32
  }
  func.func @transform_2(%arg0: i32, %arg1: i32) -> (i32, i32) {
    %c0_i32 = arith.constant 0 : i32
    %c0_i32_0 = arith.constant 0 : i32
    return %arg0, %c0_i32 : i32, i32
  }
}

</mosaic_0001>

<bundles_post_ra>
// kernel: tpu_custom_call.1
= control target key start
LH: loop header
LB: loop body
LE: loop exit
PB: predicated region body
PF: predicated region fallthrough
CT: control target
= control target key end

     0   :  { %s920_s9 = smov 0   ;;  %s922_s10 = smov 0   ;;  %s1314_s0 = inlined_call_operand.vmem [shape: f32[128,330], index: 0, kind: input, shape index: {}]   ;;  %s1315_s1 = inlined_call_operand.vmem [shape: f32[128,1], index: 1, kind: output, shape index: {0}]   ;;  %s1316_s2 = inlined_call_operand.vmem [shape: f32[128,1], index: 2, kind: output, shape index: {1}]  }
   0x1   :  { %s924_s11 = smov 0  }
   0x2 LB: > { %s25_s12 = sadd.s32 1, %s896_s10  ;;  %p759_p0 = scmp.ge.s32.totalorder %s900_s11, 1  ;;  %s900_s11 = sphi %s924_s11, %s13_s11   ;;  %s896_s10 = sphi %s922_s10, %s1324_s10   ;;  %s892_s9 = sphi %s920_s9, %s1323_s9  }
   0x3   : > { %p27_p1 = scmp.ge.s32.totalorder %s25_s12, 2  ;;  %p136_p2 = scmp.lt.s32.totalorder %s900_s11, 3 }
   0x5   : > { %s1326_s12 = smov (%p27_p1, %s25_s12), 0  ;;  %p137_p3 = pnand %p759_p0, %p136_p2 }
   0x6   : > { %s760_s13 = sshll.u32 (!%p137_p3), %s892_s9, 3  ;;  %vm196_vm0 = vcmask (!%p137_p3), 7168   ;;  %v902_v0 = vmov (!%p137_p3), -1e+30   ;;  %vm254_vm1 = vcmask (!%p137_p3), 605184   ;;  %v903_v49 = vmov (!%p137_p3), 0  }
   0x7   : > { %140 = sbr.rel (%p137_p3) target bundleno = 512 (0x200), region = 24  ;;  %p170_p4 = scmp.lt.s32.totalorder (!%p137_p3), %s760_s13, 15  ;;  %197 = vst.msk [vmem:[#allocation2] sm:$0xff] (!%p137_p3), %vm196_vm0, %v902_v0  ;;  %198 = vst.msk [vmem:[#allocation2 + $0x8] sm:$0xff] (!%p137_p3), %vm196_vm0, %v902_v0  ;;  %796 = vset.pattern.permute.xlu0 (!%p137_p3), %v903_v49  ;;  %797 = vset.pattern.permute.xlu1 (!%p137_p3), %v903_v49  ;;  %v904_v50 = vmov (!%p137_p3), 0.0  }
   0x8   : > { %199 = vst.msk [vmem:[#allocation2 + $0x10] sm:$0xff] (!%p137_p3), %vm196_vm0, %v902_v0  ;;  %200 = vst.msk [vmem:[#allocation2 + $0x18] sm:$0xff] (!%p137_p3), %vm196_vm0, %v902_v0 }
   0x9   : > { %201 = vst.msk [vmem:[#allocation2 + $0x20] sm:$0xff] (!%p137_p3), %vm196_vm0, %v902_v0  ;;  %202 = vst.msk [vmem:[#allocation2 + $0x28] sm:$0xff] (!%p137_p3), %vm196_vm0, %v902_v0 }
   0xa   : > { %203 = vst.msk [vmem:[#allocation2 + $0x30] sm:$0xff] (!%p137_p3), %vm196_vm0, %v902_v0  ;;  %204 = vst.msk [vmem:[#allocation2 + $0x38] sm:$0xff] (!%p137_p3), %vm196_vm0, %v902_v0 }
   0xb   : > { %205 = vst.msk [vmem:[#allocation3] sm:$0xff] (!%p137_p3), %vm196_vm0, %v904_v50  ;;  %206 = vst.msk [vmem:[#allocation3 + $0x8] sm:$0xff] (!%p137_p3), %vm196_vm0, %v904_v50 }
   0xc   : > { %207 = vst.msk [vmem:[#allocation3 + $0x10] sm:$0xff] (!%p137_p3), %vm196_vm0, %v904_v50  ;;  %208 = vst.msk [vmem:[#allocation3 + $0x18] sm:$0xff] (!%p137_p3), %vm196_vm0, %v904_v50 }
   0xd   : > { %209 = vst.msk [vmem:[#allocation3 + $0x20] sm:$0xff] (!%p137_p3), %vm196_vm0, %v904_v50  ;;  %210 = vst.msk [vmem:[#allocation3 + $0x28] sm:$0xff] (!%p137_p3), %vm196_vm0, %v904_v50 }
   0xe   : > { %s1328_s13 = smov (!%p170_p4, %s760_s13), 15  ;;  %211 = vst.msk [vmem:[#allocation3 + $0x30] sm:$0xff] %vm196_vm0, %v904_v50  ;;  %212 = vst.msk [vmem:[#allocation3 + $0x38] sm:$0xff] %vm196_vm0, %v904_v50  ;;  %v1074_v51 = vld [vmem:[#allocation2] sm:$0xff]  ;;  %v1081_v55 = vld [vmem:[#allocation2 + $0x8] sm:$0xff] }
   0xf   : > { %s768_s14 = smul.u32 24, %s1328_s13  ;;  %213 = vst.msk [vmem:[#allocation4] sm:$0xff] %vm196_vm0, %v904_v50  ;;  %214 = vst.msk [vmem:[#allocation4 + $0x8] sm:$0xff] %vm196_vm0, %v904_v50  ;;  %v1076_v53 = vld [vmem:[#allocation2 + $0x10] sm:$0xff]  ;;  %v1091_v60 = vld [vmem:[#allocation2 + $0x18] sm:$0xff]  ;;  %s763_s18 = sshll.u32 %s1328_s13, 3 }
  0x10   : > { %215 = vst.msk [vmem:[#allocation4 + $0x10] sm:$0xff] %vm196_vm0, %v904_v50  ;;  %216 = vst.msk [vmem:[#allocation4 + $0x18] sm:$0xff] %vm196_vm0, %v904_v50  ;;  %v1100_v0 = vld [vmem:[#allocation2 + $0x20] sm:$0xff]  ;;  %s1254_s21 = scalar_lea.vmem %s1315_s1, %s763_s18  ;;  %s1272_s24 = scalar_lea.vmem %s1316_s2, %s763_s18 }
  0x11   : > { %s952_s17 = scalar_lea.vmem %s1314_s0, %s768_s14  ;;  %217 = vst.msk [vmem:[#allocation4 + $0x20] sm:$0xff] %vm196_vm0, %v904_v50  ;;  %218 = vst.msk [vmem:[#allocation4 + $0x28] sm:$0xff] %vm196_vm0, %v904_v50 }
  0x12   : > { %v955_v1 = vld [vmem:[%s952_s17] sm:$0xff]  ;;  %v958_v2 = vld [vmem:[%s952_s17 + $0x8] sm:$0xff]  ;;  %v961_v3 = vld [vmem:[%s952_s17 + $0x10] sm:$0xff]  ;;  %219 = vst.msk [vmem:[#allocation4 + $0x30] sm:$0xff] %vm196_vm0, %v904_v50 }
  0x13   : > { %v253_v4 = vmax.f32 %v955_v1, %v958_v2  ;;  %v255_v5 = vsel %vm254_vm1, %v961_v3, -inf  ;;  %v968_v6 = vld [vmem:[%s952_s17 + $0x18] sm:$0xff]  ;;  %v971_v7 = vld [vmem:[%s952_s17 + $0x20] sm:$0xff]  ;;  %v974_v8 = vld [vmem:[%s952_s17 + $0x28] sm:$0xff]  ;;  %220 = vst.msk [vmem:[#allocation4 + $0x38] sm:$0xff] %vm196_vm0, %v904_v50 }
  0x14   : > { %v259_v9 = vmax.f32 %v968_v6, %v971_v7  ;;  %v260_v10 = vsel %vm254_vm1, %v974_v8, -inf  ;;  %v981_v11 = vld [vmem:[%s952_s17 + $0x30] sm:$0xff]  ;;  %v984_v12 = vld [vmem:[%s952_s17 + $0x38] sm:$0xff]  ;;  %v987_v13 = vld [vmem:[%s952_s17 + $0x40] sm:$0xff] }
  0x15   : > { %v256_v14 = vmax.f32 %v253_v4, %v255_v5  ;;  %v264_v15 = vmax.f32 %v981_v11, %v984_v12  ;;  %v265_v16 = vsel %vm254_vm1, %v987_v13, -inf  ;;  %v994_v17 = vld [vmem:[%s952_s17 + $0x48] sm:$0xff]  ;;  %v997_v18 = vld [vmem:[%s952_s17 + $0x50] sm:$0xff]  ;;  %v1000_v19 = vld [vmem:[%s952_s17 + $0x58] sm:$0xff] }
  0x16   : > { %v269_v20 = vmax.f32 %v994_v17, %v997_v18  ;;  %v270_v21 = vsel %vm254_vm1, %v1000_v19, -inf  ;;  %v1007_v22 = vld [vmem:[%s952_s17 + $0x60] sm:$0xff]  ;;  %v1010_v23 = vld [vmem:[%s952_s17 + $0x68] sm:$0xff]  ;;  %v1013_v24 = vld [vmem:[%s952_s17 + $0x70] sm:$0xff]  ;;  %v261_v25 = vmax.f32 %v259_v9, %v260_v10 }
  0x17   : > { %257 = vmax.xlane.f32.xlu0 %v256_v14  ;;  %v266_v26 = vmax.f32 %v264_v15, %v265_v16  ;;  %v274_v27 = vmax.f32 %v1007_v22, %v1010_v23  ;;  %v1018_v28 = vld [vmem:[%s952_s17 + $0x78] sm:$0xff]  ;;  %v1021_v29 = vld [vmem:[%s952_s17 + $0x80] sm:$0xff]  ;;  %v1024_v30 = vld [vmem:[%s952_s17 + $0x88] sm:$0xff]  ;;  %v275_v31 = vsel %vm254_vm1, %v1013_v24, -inf }
  0x18   : > { %v1029_v32 = vld [vmem:[%s952_s17 + $0x90] sm:$0xff]  ;;  %v1032_v33 = vld [vmem:[%s952_s17 + $0x98] sm:$0xff]  ;;  %v271_v34 = vmax.f32 %v269_v20, %v270_v21  ;;  %v279_v35 = vmax.f32 %v1018_v28, %v1021_v29  ;;  %v1037_v36 = vld [vmem:[%s952_s17 + $0xa0] sm:$0xff]  ;;  %v280_v37 = vsel %vm254_vm1, %v1024_v30, -inf }
  0x19   : > { %267 = vmax.xlane.f32.xlu1 %v266_v26  ;;  %v1042_v38 = vld [vmem:[%s952_s17 + $0xa8] sm:$0xff]  ;;  %v1045_v39 = vld [vmem:[%s952_s17 + $0xb0] sm:$0xff]  ;;  %v276_v40 = vmax.f32 %v274_v27, %v275_v31  ;;  %v284_v41 = vmax.f32 %v1029_v32, %v1032_v33  ;;  %v1050_v42 = vld [vmem:[%s952_s17 + $0xb8] sm:$0xff]  ;;  %v285_v43 = vsel %vm254_vm1, %v1037_v36, -inf }
  0x1a   : > { %v281_v44 = vmax.f32 %v279_v35, %v280_v37  ;;  %v289_v45 = vmax.f32 %v1042_v38, %v1045_v39  ;;  %v290_v46 = vsel %vm254_vm1, %v1050_v42, -inf  ;;  %v1110_v10 = vld [vmem:[#allocation2 + $0x28] sm:$0xff]  ;;  %v1119_v20 = vld [vmem:[#allocation2 + $0x30] sm:$0xff]  ;;  %v1129_v27 = vld [vmem:[#allocation2 + $0x38] sm:$0xff] }
  0x1b   : > { %262 = vmax.xlane.f32.xlu0 %v261_v25  ;;  %v286_v47 = vmax.f32 %v284_v41, %v285_v43 }
  0x1c   : > { %v291_v48 = vmax.f32 %v289_v45, %v290_v46 }
  0x1d   : > { %272 = vmax.xlane.f32.xlu1 %v271_v34 }
  0x1f   : > { %277 = vmax.xlane.f32.xlu0 %v276_v40 }
  0x21   : > { %282 = vmax.xlane.f32.xlu1 %v281_v44 }
  0x23   : > { %287 = vmax.xlane.f32.xlu0 %v286_v47 }
  0x25   : > { %292 = vmax.xlane.f32.xlu1 %v291_v48 }
  0xa4   : > { %v258_v52 = vpop.xlane.xlu0 %257 }
  0xa5   : > { %v1079_v54 = vmax.f32 %v1074_v51, %v258_v52 }
  0xa6   : > { %v268_v56 = vpop.xlane.xlu1 %267 }
  0xa7   : > { %v302_v57 = vsub.f32 %v1074_v51, %v1079_v54  ;;  %511 = vst.msk [vmem:[#allocation2] sm:$0xff] %vm196_vm0, %v1079_v54  ;;  %344 = vperm.xlu0 %796, %v1079_v54   ;;  %v1089_v58 = vmax.f32 %v1076_v53, %v268_v56 }
  0xa8   : > { %v263_v59 = vpop.xlane.xlu0 %262 }
  0xa9   : > { %v1094_v61 = vmax.f32 %v1081_v55, %v263_v59  ;;  %513 = vst.msk [vmem:[#allocation2 + $0x10] sm:$0xff] %vm196_vm0, %v1089_v58 }
  0xaa   : > { %v273_v63 = vpop.xlane.xlu1 %272 }
  0xab   : > { %v303_v4 = vsub.f32 %v1081_v55, %v1094_v61  ;;  %512 = vst.msk [vmem:[#allocation2 + $0x8] sm:$0xff] %vm196_vm0, %v1094_v61  ;;  %349 = vperm.xlu1 %797, %v1094_v61   ;;  %v1108_v5 = vmax.f32 %v1091_v60, %v273_v63 }
  0xac   : > { %v278_v9 = vpop.xlane.xlu0 %277 }
  0xad   : > { %514 = vst.msk [vmem:[#allocation2 + $0x18] sm:$0xff] %vm196_vm0, %v1108_v5  ;;  %v1117_v15 = vmax.f32 %v1100_v0, %v278_v9 }
  0xae   : > { %v283_v16 = vpop.xlane.xlu1 %282 }
  0xaf   : > { %354 = vperm.xlu1 %797, %v1089_v58   ;;  %515 = vst.msk [vmem:[#allocation2 + $0x20] sm:$0xff] %vm196_vm0, %v1117_v15  ;;  %v1127_v25 = vmax.f32 %v1110_v10, %v283_v16  ;;  %v1319_v51 = vsub.f32 %v1100_v0, %v1117_v15 }
  0xb0   : > { %v288_v26 = vpop.xlane.xlu0 %287 }
  0xb1   : > { %516 = vst.msk [vmem:[#allocation2 + $0x28] sm:$0xff] %vm196_vm0, %v1127_v25  ;;  %v1136_v34 = vmax.f32 %v1119_v20, %v288_v26  ;;  %v318_v54 = vmul.f32 1.442695, %v1319_v51  ;;  %v520_v51 = vld [vmem:[#allocation4 + $0x8] sm:$0xff] }
  0xb2   : > { %v293_v35 = vpop.xlane.xlu1 %292 }
  0xb3   : > { %359 = vperm.xlu1 %797, %v1108_v5   ;;  %517 = vst.msk [vmem:[#allocation2 + $0x30] sm:$0xff] %vm196_vm0, %v1136_v34  ;;  %v1144_v40 = vmax.f32 %v1129_v27, %v293_v35  ;;  %v1321_v0 = vsub.f32 %v1119_v20, %v1136_v34 }
  0xb5   : > { %518 = vst.msk [vmem:[#allocation2 + $0x38] sm:$0xff] %vm196_vm0, %v1144_v40 }
  0xb7   : > { %364 = vperm.xlu1 %797, %v1117_v15   ;;  %v322_v15 = vmul.f32 1.442695, %v1321_v0 }
  0xbb   : > { %369 = vperm.xlu1 %797, %v1127_v25  }
  0xbf   : > { %374 = vperm.xlu1 %797, %v1136_v34   ;;  %v330_v34 = vld [vmem:[#allocation3 + $0x20] sm:$0xff] }
  0xc3   : > { %379 = vperm.xlu1 %797, %v1144_v40  }
 0x126   : > { %v345_v43 = vpop.permute.xlu0 %344 }
 0x127   : > { %v382_v44 = vsub.f32 %v955_v1, %v345_v43  ;;  %v383_v45 = vsub.f32 %v958_v2, %v345_v43  ;;  %v384_v46 = vsub.f32 %v961_v3, %v345_v43 }
 0x129   : > { %v406_v47 = vmul.f32 1.442695, %v382_v44  ;;  %v408_v48 = vmul.f32 1.442695, %v383_v45  ;;  %v410_v49 = vmul.f32 1.442695, %v384_v46 }
 0x12a   : > { %v350_v50 = vpop.permute.xlu1 %349 }
 0x12b   : > { %798 = vpow2.f32 %v406_v47  ;;  %v385_v52 = vsub.f32 %v968_v6, %v350_v50  ;;  %v386_v56 = vsub.f32 %v971_v7, %v350_v50  ;;  %v387_v59 = vsub.f32 %v974_v8, %v350_v50 }
 0x12c   : > { %800 = vpow2.f32 %v408_v48 }
 0x12d   : > { %802 = vpow2.f32 %v410_v49  ;;  %v412_v63 = vmul.f32 1.442695, %v385_v52  ;;  %v414_v9 = vmul.f32 1.442695, %v386_v56  ;;  %v416_v16 = vmul.f32 1.442695, %v387_v59 }
 0x12e   : > { %v355_v26 = vpop.permute.xlu1 %354 }
 0x12f   : > { %804 = vpow2.f32 %v412_v63  ;;  %v388_v35 = vsub.f32 %v981_v11, %v355_v26  ;;  %v389_v43 = vsub.f32 %v984_v12, %v355_v26  ;;  %v390_v44 = vsub.f32 %v987_v13, %v355_v26 }
 0x130   : > { %806 = vpow2.f32 %v414_v9 }
 0x131   : > { %808 = vpow2.f32 %v416_v16  ;;  %v418_v45 = vmul.f32 1.442695, %v388_v35  ;;  %v420_v46 = vmul.f32 1.442695, %v389_v43  ;;  %v422_v47 = vmul.f32 1.442695, %v390_v44 }
 0x132   : > { %v360_v41 = vpop.permute.xlu1 %359 }
 0x133   : > { %810 = vpow2.f32 %v418_v45  ;;  %v391_v48 = vsub.f32 %v994_v17, %v360_v41  ;;  %v392_v49 = vsub.f32 %v997_v18, %v360_v41  ;;  %v393_v50 = vsub.f32 %v1000_v19, %v360_v41 }
 0x134   : > { %812 = vpow2.f32 %v420_v46 }
 0x135   : > { %v799_v52 = vpop.eup %798  ;;  %814 = vpow2.f32 %v422_v47  ;;  %v424_v56 = vmul.f32 1.442695, %v391_v48  ;;  %v426_v59 = vmul.f32 1.442695, %v392_v49  ;;  %v428_v63 = vmul.f32 1.442695, %v393_v50 }
 0x136   : > { %v801_v26 = vpop.eup %800  ;;  %v365_v9 = vpop.permute.xlu1 %364 }
 0x137   : > { %v803_v16 = vpop.eup %802  ;;  %816 = vpow2.f32 %v424_v56  ;;  %v394_v35 = vsub.f32 %v1007_v22, %v365_v9  ;;  %v395_v43 = vsub.f32 %v1010_v23, %v365_v9  ;;  %v396_v44 = vsub.f32 %v1013_v24, %v365_v9 }
 0x138   : > { %818 = vpow2.f32 %v426_v59  ;;  %v454_v45 = vadd.f32 %v801_v26, %v799_v52  ;;  %v455_v41 = vsel %vm254_vm1, %v803_v16, 0.0 }
 0x139   : > { %v805_v46 = vpop.eup %804  ;;  %820 = vpow2.f32 %v428_v63  ;;  %v430_v47 = vmul.f32 1.442695, %v394_v35  ;;  %v432_v48 = vmul.f32 1.442695, %v395_v43  ;;  %v434_v49 = vmul.f32 1.442695, %v396_v44 }
 0x13a   : > { %v807_v50 = vpop.eup %806  ;;  %v370_v37 = vpop.permute.xlu1 %369  ;;  %v456_v31 = vadd.f32 %v455_v41, %v454_v45 }
 0x13b   : > { %v809_v21 = vpop.eup %808  ;;  %822 = vpow2.f32 %v430_v47  ;;  %v397_v56 = vsub.f32 %v1018_v28, %v370_v37  ;;  %v398_v14 = vsub.f32 %v1021_v29, %v370_v37  ;;  %v399_v9 = vsub.f32 %v1024_v30, %v370_v37 }
 0x13c   : > { %824 = vpow2.f32 %v432_v48  ;;  %457 = vadd.xlane.f32.xlu1 %v456_v31  ;;  %v459_v52 = vadd.f32 %v807_v50, %v805_v46  ;;  %v460_v59 = vsel %vm254_vm1, %v809_v21, 0.0 }
 0x13d   : > { %v811_v63 = vpop.eup %810  ;;  %826 = vpow2.f32 %v434_v49  ;;  %v436_v26 = vmul.f32 1.442695, %v397_v56  ;;  %v438_v16 = vmul.f32 1.442695, %v398_v14  ;;  %v440_v35 = vmul.f32 1.442695, %v399_v9 }
 0x13e   : > { %v813_v43 = vpop.eup %812  ;;  %v461_v44 = vadd.f32 %v460_v59, %v459_v52  ;;  %v375_v45 = vpop.permute.xlu1 %374 }
 0x13f   : > { %v815_v41 = vpop.eup %814  ;;  %828 = vpow2.f32 %v436_v26  ;;  %v400_v47 = vsub.f32 %v1029_v32, %v375_v45  ;;  %v401_v62 = vsub.f32 %v1032_v33, %v375_v45  ;;  %v402_v37 = vsub.f32 %v1037_v36, %v375_v45 }
 0x140   : > { %830 = vpow2.f32 %v438_v16  ;;  %462 = vadd.xlane.f32.xlu0 %v461_v44  ;;  %v464_v31 = vadd.f32 %v813_v43, %v811_v63  ;;  %v465_v21 = vsel %vm254_vm1, %v815_v41, 0.0 }
 0x141   : > { %v817_v46 = vpop.eup %816  ;;  %832 = vpow2.f32 %v440_v35  ;;  %v442_v14 = vmul.f32 1.442695, %v400_v47  ;;  %v444_v48 = vmul.f32 1.442695, %v401_v62  ;;  %v446_v49 = vmul.f32 1.442695, %v402_v37 }
 0x142   : > { %v819_v50 = vpop.eup %818  ;;  %v466_v56 = vadd.f32 %v465_v21, %v464_v31  ;;  %v380_v9 = vpop.permute.xlu1 %379 }
 0x143   : > { %v821_v52 = vpop.eup %820  ;;  %834 = vpow2.f32 %v442_v14  ;;  %v403_v59 = vsub.f32 %v1042_v38, %v380_v9  ;;  %v404_v26 = vsub.f32 %v1045_v39, %v380_v9  ;;  %v405_v16 = vsub.f32 %v1050_v42, %v380_v9 }
 0x144   : > { %836 = vpow2.f32 %v444_v48  ;;  %467 = vadd.xlane.f32.xlu0 %v466_v56  ;;  %v469_v63 = vadd.f32 %v819_v50, %v817_v46  ;;  %v470_v43 = vsel %vm254_vm1, %v821_v52, 0.0 }
 0x145   : > { %v823_v35 = vpop.eup %822  ;;  %838 = vpow2.f32 %v446_v49  ;;  %v448_v62 = vmul.f32 1.442695, %v403_v59  ;;  %v450_v44 = vmul.f32 1.442695, %v404_v26  ;;  %v452_v45 = vmul.f32 1.442695, %v405_v16 }
 0x146   : > { %v825_v41 = vpop.eup %824  ;;  %v471_v47 = vadd.f32 %v470_v43, %v469_v63  ;;  %v527_v63 = vadd.f32 %v958_v2, %v955_v1  ;;  %v533_v2 = vsel %vm254_vm1, %v974_v8, 0.0  ;;  %v548_v8 = vsel %vm254_vm1, %v1013_v24, 0.0 }
 0x147   : > { %v827_v37 = vpop.eup %826  ;;  %840 = vpow2.f32 %v448_v62  ;;  %v474_v31 = vadd.f32 %v825_v41, %v823_v35  ;;  %v528_v35 = vsel %vm254_vm1, %v961_v3, 0.0  ;;  %v538_v3 = vsel %vm254_vm1, %v987_v13, 0.0 }
 0x148   : > { %842 = vpow2.f32 %v450_v44  ;;  %472 = vadd.xlane.f32.xlu1 %v471_v47  ;;  %v475_v21 = vsel %vm254_vm1, %v827_v37, 0.0  ;;  %v529_v37 = vadd.f32 %v528_v35, %v527_v63  ;;  %v552_v13 = vadd.f32 %v1021_v29, %v1018_v28 }
 0x149   : > { %v829_v14 = vpop.eup %828  ;;  %844 = vpow2.f32 %v452_v45  ;;  %v476_v48 = vadd.f32 %v475_v21, %v474_v31  ;;  %v532_v31 = vadd.f32 %v971_v7, %v968_v6  ;;  %v537_v21 = vadd.f32 %v984_v12, %v981_v11 }
 0x14a   : > { %v831_v46 = vpop.eup %830  ;;  %v543_v6 = vsel %vm254_vm1, %v1000_v19, 0.0  ;;  %v547_v7 = vadd.f32 %v1010_v23, %v1007_v22  ;;  %v558_v19 = vsel %vm254_vm1, %v1037_v36, 0.0  ;;  %v562_v24 = vadd.f32 %v1045_v39, %v1042_v38 }
 0x14b   : > { %v833_v50 = vpop.eup %832  ;;  %477 = vadd.xlane.f32.xlu0 %v476_v48  ;;  %v479_v56 = vadd.f32 %v831_v46, %v829_v14  ;;  %v542_v48 = vadd.f32 %v997_v18, %v994_v17  ;;  %v534_v46 = vadd.f32 %v533_v2, %v532_v31  ;;  %v557_v17 = vadd.f32 %v1032_v33, %v1029_v32 }
 0x14c   : > { %v480_v49 = vsel %vm254_vm1, %v833_v50, 0.0  ;;  %v539_v50 = vadd.f32 %v538_v3, %v537_v21  ;;  %v549_v12 = vadd.f32 %v548_v8, %v547_v7  ;;  %v553_v18 = vsel %vm254_vm1, %v1024_v30, 0.0 }
 0x14d   : > { %v835_v9 = vpop.eup %834  ;;  %v481_v52 = vadd.f32 %v480_v49, %v479_v56  ;;  %v544_v11 = vadd.f32 %v543_v6, %v542_v48  ;;  %v554_v22 = vadd.f32 %v553_v18, %v552_v13  ;;  %v559_v23 = vadd.f32 %v558_v19, %v557_v17  ;;  %v332_v48 = vld [vmem:[#allocation3 + $0x30] sm:$0xff]  ;;  %v333_v17 = vld [vmem:[#allocation3 + $0x38] sm:$0xff] }
 0x14e   : > { %v837_v59 = vpop.eup %836  ;;  %v563_v56 = vsel %vm254_vm1, %v1050_v42, 0.0  ;;  %v310_v29 = vmul.f32 1.442695, %v302_v57  ;;  %v312_v30 = vmul.f32 1.442695, %v303_v4  ;;  %v1317_v32 = vsub.f32 %v1076_v53, %v1089_v58  ;;  %v326_v42 = vld [vmem:[#allocation3] sm:$0xff] }
 0x14f   : > { %v839_v26 = vpop.eup %838  ;;  %482 = vadd.xlane.f32.xlu1 %v481_v52  ;;  %v484_v16 = vadd.f32 %v837_v59, %v835_v9  ;;  %v564_v28 = vadd.f32 %v563_v56, %v562_v24  ;;  %v1318_v36 = vsub.f32 %v1091_v60, %v1108_v5  ;;  %v327_v4 = vld [vmem:[#allocation3 + $0x8] sm:$0xff]  ;;  %v1320_v53 = vsub.f32 %v1110_v10, %v1127_v25  ;;  %v328_v52 = vld [vmem:[#allocation3 + $0x10] sm:$0xff]  ;;  %v329_v10 = vld [vmem:[#allocation3 + $0x18] sm:$0xff] }
 0x150   : > { %v485_v43 = vsel %vm254_vm1, %v839_v26, 0.0  ;;  %846 = vpow2.f32 %v310_v29  ;;  %v314_v33 = vmul.f32 1.442695, %v1317_v32  ;;  %v1322_v25 = vsub.f32 %v1129_v27, %v1144_v40  ;;  %v331_v40 = vld [vmem:[#allocation3 + $0x28] sm:$0xff]  ;;  %v519_v24 = vld [vmem:[#allocation4] sm:$0xff] }
 0x151   : > { %v841_v62 = vpop.eup %840  ;;  %v486_v44 = vadd.f32 %v485_v43, %v484_v16  ;;  %848 = vpow2.f32 %v312_v30  ;;  %v316_v38 = vmul.f32 1.442695, %v1318_v36  ;;  %v320_v58 = vmul.f32 1.442695, %v1320_v53  ;;  %v587_v29 = vld [vmem:[#allocation2 + $0x8] sm:$0xff] }
 0x152   : > { %v843_v45 = vpop.eup %842  ;;  %850 = vpow2.f32 %v314_v33  ;;  %v324_v43 = vmul.f32 1.442695, %v1322_v25  ;;  %v524_v25 = vld [vmem:[#allocation4 + $0x28] sm:$0xff] }
 0x153   : > { %v845_v41 = vpop.eup %844  ;;  %487 = vadd.xlane.f32.xlu0 %v486_v44  ;;  %v489_v47 = vadd.f32 %v843_v45, %v841_v62  ;;  %852 = vpow2.f32 %v316_v38 }
 0x154   : > { %v490_v1 = vsel %vm254_vm1, %v845_v41, 0.0  ;;  %854 = vpow2.f32 %v318_v54  ;;  %v521_v54 = vld [vmem:[#allocation4 + $0x10] sm:$0xff] }
 0x155   : > { %v491_v14 = vadd.f32 %v490_v1, %v489_v47  ;;  %856 = vpow2.f32 %v320_v58 }
 0x156   : > { %858 = vpow2.f32 %v322_v15  ;;  %v589_v15 = vld [vmem:[#allocation2 + $0x18] sm:$0xff] }
 0x157   : > { %492 = vadd.xlane.f32.xlu1 %v491_v14  ;;  %530 = vadd.xlane.f32.xlu0 %v529_v37 }
 0x15a   : > { %v847_v39 = vpop.eup %846 }
 0x15b   : > { %535 = vadd.xlane.f32.xlu1 %v534_v46  ;;  %540 = vadd.xlane.f32.xlu0 %v539_v50  ;;  %v334_v57 = vmul.f32 %v847_v39, %v326_v42  ;;  %v849_v55 = vpop.eup %848 }
 0x15c   : > { %v335_v60 = vmul.f32 %v849_v55, %v327_v4  ;;  %v851_v5 = vpop.eup %850  ;;  %v588_v55 = vld [vmem:[#allocation2 + $0x10] sm:$0xff] }
 0x15d   : > { %v336_v26 = vmul.f32 %v851_v5, %v328_v52  ;;  %v853_v16 = vpop.eup %852  ;;  %v523_v52 = vld [vmem:[#allocation4 + $0x20] sm:$0xff] }
 0x15e   : > { %v855_v44 = vpop.eup %854  ;;  %v337_v20 = vmul.f32 %v853_v16, %v329_v10 }
 0x15f   : > { %545 = vadd.xlane.f32.xlu1 %v544_v11  ;;  %550 = vadd.xlane.f32.xlu0 %v549_v12  ;;  %v338_v37 = vmul.f32 %v855_v44, %v330_v34  ;;  %v857_v31 = vpop.eup %856  ;;  %v586_v12 = vld [vmem:[#allocation2] sm:$0xff] }
 0x160   : > { %v339_v2 = vmul.f32 %v857_v31, %v331_v40  ;;  %v859_v3 = vpop.eup %858  ;;  %v590_v34 = vld [vmem:[#allocation2 + $0x20] sm:$0xff] }
 0x161   : > { %v340_v8 = vmul.f32 %v859_v3, %v332_v48  ;;  %v591_v3 = vld [vmem:[#allocation2 + $0x28] sm:$0xff] }
 0x163   : > { %555 = vadd.xlane.f32.xlu1 %v554_v22  ;;  %560 = vadd.xlane.f32.xlu0 %v559_v23 }
 0x167   : > { %565 = vadd.xlane.f32.xlu1 %v564_v28 }
 0x1c9   : > { %v458_v61 = vpop.xlane.xlu1 %457 }
 0x1ca   : > { %v494_v49 = vadd.f32 %v458_v61, %v334_v57 }
 0x1cc   : > { %503 = vst.msk [vmem:[#allocation3] sm:$0xff] %vm196_vm0, %v494_v49 }
 0x1cd   : > { %v463_v9 = vpop.xlane.xlu0 %462 }
 0x1ce   : > { %v495_v59 = vadd.f32 %v463_v9, %v335_v60  ;;  %v522_v9 = vld [vmem:[#allocation4 + $0x18] sm:$0xff] }
 0x1d0   : > { %504 = vst.msk [vmem:[#allocation3 + $0x8] sm:$0xff] %vm196_vm0, %v495_v59 }
 0x1d1   : > { %v468_v63 = vpop.xlane.xlu0 %467 }
 0x1d2   : > { %v496_v35 = vadd.f32 %v468_v63, %v336_v26 }
 0x1d3   : > { %v594_v62 = vld [vmem:[#allocation3] sm:$0xff] }
 0x1d4   : > { %860 = vlog2.f32 %v594_v62  ;;  %505 = vst.msk [vmem:[#allocation3 + $0x10] sm:$0xff] %vm196_vm0, %v496_v35 }
 0x1d5   : > { %v473_v45 = vpop.xlane.xlu1 %472  ;;  %862 = vpow2.f32 %v324_v43 }
 0x1d6   : > { %v497_v41 = vadd.f32 %v473_v45, %v337_v20  ;;  %v525_v20 = vld [vmem:[#allocation4 + $0x30] sm:$0xff] }
 0x1d7   : > { %v595_v47 = vld [vmem:[#allocation3 + $0x8] sm:$0xff] }
 0x1d8   : > { %864 = vlog2.f32 %v595_v47  ;;  %506 = vst.msk [vmem:[#allocation3 + $0x18] sm:$0xff] %vm196_vm0, %v497_v41  ;;  %v478_v27 = vpop.xlane.xlu0 %477 }
 0x1d9   : > { %v498_v21 = vadd.f32 %v478_v27, %v338_v37 }
 0x1db   : > { %v596_v1 = vld [vmem:[#allocation3 + $0x10] sm:$0xff]  ;;  %507 = vst.msk [vmem:[#allocation3 + $0x20] sm:$0xff] %vm196_vm0, %v498_v21 }
 0x1dc   : > { %866 = vlog2.f32 %v596_v1  ;;  %v483_v14 = vpop.xlane.xlu1 %482 }
 0x1dd   : > { %v499_v46 = vadd.f32 %v483_v14, %v339_v2  ;;  %v526_v2 = vld [vmem:[#allocation4 + $0x38] sm:$0xff] }
 0x1de   : > { %v861_v50 = vpop.eup %860 }
 0x1df   : > { %v603_v6 = vmul.f32 0.6931472, %v861_v50  ;;  %v597_v7 = vld [vmem:[#allocation3 + $0x18] sm:$0xff]  ;;  %508 = vst.msk [vmem:[#allocation3 + $0x28] sm:$0xff] %vm196_vm0, %v499_v46  ;;  %v863_v11 = vpop.eup %862 }
 0x1e0   : > { %868 = vlog2.f32 %v597_v7  ;;  %v488_v13 = vpop.xlane.xlu0 %487  ;;  %v341_v28 = vmul.f32 %v863_v11, %v333_v17  ;;  %v592_v11 = vld [vmem:[#allocation2 + $0x30] sm:$0xff] }
 0x1e1   : > { %v618_v18 = vadd.f32 %v603_v6, %v586_v12  ;;  %v500_v19 = vadd.f32 %v488_v13, %v340_v8 }
 0x1e2   : > { %v865_v22 = vpop.eup %864  ;;  %v598_v23 = vld [vmem:[#allocation3 + $0x20] sm:$0xff] }
 0x1e3   : > { %626 = vst.msk [vmem:[%s1254_s21] sm:$0xff] %vm196_vm0, %v618_v18  ;;  %v605_v56 = vmul.f32 0.6931472, %v865_v22  ;;  %870 = vlog2.f32 %v598_v23  ;;  %509 = vst.msk [vmem:[#allocation3 + $0x30] sm:$0xff] %vm196_vm0, %v500_v19  ;;  %v593_v22 = vld [vmem:[#allocation2 + $0x38] sm:$0xff] }
 0x1e4   : > { %v493_v30 = vpop.xlane.xlu1 %492  ;;  %v531_v32 = vpop.xlane.xlu0 %530 }
 0x1e5   : > { %v619_v33 = vadd.f32 %v605_v56, %v587_v29  ;;  %v501_v36 = vadd.f32 %v493_v30, %v341_v28  ;;  %v567_v38 = vadd.f32 %v531_v32, %v519_v24 }
 0x1e6   : > { %v867_v39 = vpop.eup %866  ;;  %v599_v42 = vld [vmem:[#allocation3 + $0x28] sm:$0xff] }
 0x1e7   : > { %627 = vst.msk [vmem:[%s1254_s21 + $0x8] sm:$0xff] %vm196_vm0, %v619_v33  ;;  %v607_v57 = vmul.f32 0.6931472, %v867_v39  ;;  %872 = vlog2.f32 %v599_v42  ;;  %510 = vst.msk [vmem:[#allocation3 + $0x38] sm:$0xff] %vm196_vm0, %v501_v36 }
 0x1e8   : > { %575 = vst.msk [vmem:[#allocation4] sm:$0xff] %vm196_vm0, %v567_v38  ;;  %v536_v61 = vpop.xlane.xlu1 %535  ;;  %v541_v4 = vpop.xlane.xlu0 %540 }
 0x1e9   : > { %v620_v53 = vadd.f32 %v607_v57, %v588_v55  ;;  %v568_v58 = vadd.f32 %v536_v61, %v520_v51  ;;  %v569_v49 = vadd.f32 %v541_v4, %v521_v54 }
 0x1ea   : > { %v869_v60 = vpop.eup %868  ;;  %v600_v5 = vld [vmem:[#allocation3 + $0x30] sm:$0xff] }
 0x1eb   : > { %628 = vst.msk [vmem:[%s1254_s21 + $0x10] sm:$0xff] %vm196_vm0, %v620_v53  ;;  %v609_v0 = vmul.f32 0.6931472, %v869_v60  ;;  %874 = vlog2.f32 %v600_v5  ;;  %576 = vst.msk [vmem:[#allocation4 + $0x8] sm:$0xff] %vm196_vm0, %v568_v58 }
 0x1ec   : > { %577 = vst.msk [vmem:[#allocation4 + $0x10] sm:$0xff] %vm196_vm0, %v569_v49  ;;  %v546_v59 = vpop.xlane.xlu1 %545  ;;  %v551_v26 = vpop.xlane.xlu0 %550 }
 0x1ed   : > { %v871_v16 = vpop.eup %870  ;;  %v621_v63 = vadd.f32 %v609_v0, %v589_v15  ;;  %v570_v10 = vadd.f32 %v546_v59, %v522_v9  ;;  %v571_v43 = vadd.f32 %v551_v26, %v523_v52 }
 0x1ee   : > { %v611_v35 = vmul.f32 0.6931472, %v871_v16  ;;  %v601_v62 = vld [vmem:[#allocation3 + $0x38] sm:$0xff] }
 0x1ef   : > { %v634_v44 = vld [vmem:[#allocation4] sm:$0xff]  ;;  %629 = vst.msk [vmem:[%s1254_s21 + $0x18] sm:$0xff] %vm196_vm0, %v621_v63  ;;  %876 = vlog2.f32 %v601_v62  ;;  %578 = vst.msk [vmem:[#allocation4 + $0x18] sm:$0xff] %vm196_vm0, %v570_v10 }
 0x1f0   : > { %642 = vst.msk [vmem:[%s1272_s24] sm:$0xff] %vm196_vm0, %v634_v44  ;;  %579 = vst.msk [vmem:[#allocation4 + $0x20] sm:$0xff] %vm196_vm0, %v571_v43  ;;  %v622_v45 = vadd.f32 %v611_v35, %v590_v34  ;;  %v556_v41 = vpop.xlane.xlu1 %555  ;;  %v561_v47 = vpop.xlane.xlu0 %560 }
 0x1f1   : > { %v873_v37 = vpop.eup %872  ;;  %v572_v31 = vadd.f32 %v556_v41, %v524_v25  ;;  %v573_v27 = vadd.f32 %v561_v47, %v525_v20 }
 0x1f2   : > { %630 = vst.msk [vmem:[%s1254_s21 + $0x20] sm:$0xff] %vm196_vm0, %v622_v45  ;;  %v613_v40 = vmul.f32 0.6931472, %v873_v37  ;;  %v635_v21 = vld [vmem:[#allocation4 + $0x8] sm:$0xff] }
 0x1f3   : > { %v636_v1 = vld [vmem:[#allocation4 + $0x10] sm:$0xff]  ;;  %643 = vst.msk [vmem:[%s1272_s24 + $0x8] sm:$0xff] %vm196_vm0, %v635_v21  ;;  %580 = vst.msk [vmem:[#allocation4 + $0x28] sm:$0xff] %vm196_vm0, %v572_v31 }
 0x1f4   : > { %644 = vst.msk [vmem:[%s1272_s24 + $0x10] sm:$0xff] %vm196_vm0, %v636_v1  ;;  %581 = vst.msk [vmem:[#allocation4 + $0x30] sm:$0xff] %vm196_vm0, %v573_v27  ;;  %v623_v14 = vadd.f32 %v613_v40, %v591_v3  ;;  %v566_v48 = vpop.xlane.xlu1 %565 }
 0x1f5   : > { %v875_v46 = vpop.eup %874  ;;  %v574_v50 = vadd.f32 %v566_v48, %v526_v2 }
 0x1f6   : > { %631 = vst.msk [vmem:[%s1254_s21 + $0x28] sm:$0xff] %vm196_vm0, %v623_v14  ;;  %v615_v6 = vmul.f32 0.6931472, %v875_v46  ;;  %v637_v7 = vld [vmem:[#allocation4 + $0x18] sm:$0xff] }
 0x1f7   : > { %v638_v8 = vld [vmem:[#allocation4 + $0x20] sm:$0xff]  ;;  %645 = vst.msk [vmem:[%s1272_s24 + $0x18] sm:$0xff] %vm196_vm0, %v637_v7  ;;  %582 = vst.msk [vmem:[#allocation4 + $0x38] sm:$0xff] %vm196_vm0, %v574_v50 }
 0x1f8   : > { %646 = vst.msk [vmem:[%s1272_s24 + $0x20] sm:$0xff] %vm196_vm0, %v638_v8  ;;  %v624_v12 = vadd.f32 %v615_v6, %v592_v11 }
 0x1f9   : > { %v877_v13 = vpop.eup %876 }
 0x1fa   : > { %632 = vst.msk [vmem:[%s1254_s21 + $0x30] sm:$0xff] %vm196_vm0, %v624_v12  ;;  %v617_v17 = vmul.f32 0.6931472, %v877_v13  ;;  %v639_v18 = vld [vmem:[#allocation4 + $0x28] sm:$0xff] }
 0x1fb   : > { %v640_v19 = vld [vmem:[#allocation4 + $0x30] sm:$0xff]  ;;  %647 = vst.msk [vmem:[%s1272_s24 + $0x28] sm:$0xff] %vm196_vm0, %v639_v18 }
 0x1fc   : > { %648 = vst.msk [vmem:[%s1272_s24 + $0x30] sm:$0xff] %vm196_vm0, %v640_v19  ;;  %v625_v23 = vadd.f32 %v617_v17, %v593_v22 }
 0x1fe   : > { %633 = vst.msk [vmem:[%s1254_s21 + $0x38] sm:$0xff] %vm196_vm0, %v625_v23  ;;  %v641_v24 = vld [vmem:[#allocation4 + $0x38] sm:$0xff] }
 0x1ff   : > { %649 = vst.msk [vmem:[%s1272_s24 + $0x38] sm:$0xff] %vm196_vm0, %v641_v24 }
 0x200 PF: > { %s13_s11 = sadd.s32 1, %s900_s11   ;;  %s1323_s9 = smov %s896_s10 }
 0x201   : > { %p10_p5 = scmp.ge.s32.totalorder %s13_s11, 4   ;;  %s1324_s10 = smov %s1326_s12 }
 0x203   :  { %12 = sbr.rel (!%p10_p5) target bundleno = 2 (0x2), region = 74 }

</bundles_post_ra>
